<compile_context>
chip_gen: v7x
topology: tpu7x:2x2x1
jax: 0.10.0
libtpu: 0.0.40
codegen_flags: <defaults>
</compile_context>

<pallas_src>
import jax
import jax.numpy as jnp
from jax.experimental import pallas as pl
from jax.experimental.pallas import tpu as pltpu

_SMALL_BYTES = 512 * 1024        # below this, plain XLA add wins (dispatch overhead)
_TILE_BYTES = 4 * 1024 * 1024    # ~4 MiB per array per buffer -> 24 MiB pipeline
_VMEM_LIMIT = 32 * 1024 * 1024   # covers the pipeline on all gens (raises v5e's 16 MiB default)


def _add_kernel(a_ref, b_ref, o_ref):
    # Elementwise VPU add on the current VMEM tile.
    o_ref[...] = a_ref[...] + b_ref[...]


def _pallas_add_2d(a2: jax.Array, b2: jax.Array, tr: int, lane: int) -> jax.Array:
    rows = a2.shape[0]
    total_bytes = a2.size * a2.dtype.itemsize
    grid = (pl.cdiv(rows, tr),)
    return pl.pallas_call(
        _add_kernel,
        out_shape=jax.ShapeDtypeStruct((rows, lane), a2.dtype),
        grid_spec=pl.GridSpec(
            grid=grid,
            in_specs=[
                pl.BlockSpec((tr, lane), lambda i: (i, 0)),
                pl.BlockSpec((tr, lane), lambda i: (i, 0)),
            ],
            out_specs=pl.BlockSpec((tr, lane), lambda i: (i, 0)),
        ),
        compiler_params=pltpu.CompilerParams(
            # Independent row tiles -> shard across TensorCores on v7x.
            dimension_semantics=("parallel",),
            vmem_limit_bytes=_VMEM_LIMIT,
        ),
        cost_estimate=pl.CostEstimate(
            flops=a2.size,
            transcendentals=0,
            bytes_accessed=3 * total_bytes,
        ),
    )(a2, b2)


def add(a: jax.Array, b: jax.Array) -> jax.Array:
    """Elementwise add matching `Add.forward(a, b)` semantics."""
    # General `a + b` semantics (broadcasting / dtype promotion) go through XLA,
    # which is already at the HBM roofline for elementwise ops.
    if a.shape != b.shape or a.dtype != b.dtype:
        return a + b

    total = int(a.size)
    itemsize = a.dtype.itemsize
    total_bytes = total * itemsize

    # Small-tensor fast path: pallas dispatch overhead dwarfs the copy time.
    if total == 0 or total_bytes < _SMALL_BYTES:
        return a + b

    # Pick a lane-dense width (multiple of 128) that exactly divides the flat size
    # so no pad/slice (extra HBM passes) is ever needed.
    lane = next((c for c in (512, 256, 128) if total % c == 0), None)
    if lane is None:
        # Ragged remainder (< 128 trailing elements): plain XLA add avoids the
        # extra full HBM passes a pad/slice or split/concat path would cost.
        return a + b

    rows = total // lane

    # Row tile: ~_TILE_BYTES per array per pipeline buffer, aligned to 32 rows
    # (covers f32/bf16/int8 sublane packing), and capped so the grid has >= ~4
    # steps so v7x's two TensorCores both get work.
    budget_rows = max(32, (_TILE_BYTES // (lane * itemsize)) // 32 * 32)
    cap_rows = max(32, (rows // 4) // 32 * 32)
    tr = min(budget_rows, cap_rows, rows)

    a2 = a.reshape(rows, lane)
    b2 = b.reshape(rows, lane)
    out2 = _pallas_add_2d(a2, b2, tr, lane)
    return out2.reshape(a.shape)


if __name__ == "__main__":
    key = jax.random.PRNGKey(0)
    ka, kb = jax.random.split(key)

    # 1) Small MobileNetV2-style residual tensors (batch=2, channels=4, 16x16):
    #    exercises the small-tensor fast path.
    a_small = jax.random.normal(ka, (2, 4, 16, 16), dtype=jnp.float32)
    b_small = jax.random.normal(kb, (2, 4, 16, 16), dtype=jnp.float32)
    out_small = add(a_small, b_small)
    jax.block_until_ready(out_small)
    ref_small = a_small + b_small
    assert out_small.shape == ref_small.shape
    assert jnp.allclose(out_small, ref_small, atol=1e-6, rtol=1e-6)

    # 2) A modest MobileNetV2 feature-map-sized residual (2, 32, 56, 56) ~784 KiB:
    #    exercises the Pallas path (lane-dense tiling, multi-step parallel grid,
    #    masked partial last block).
    ka2, kb2 = jax.random.split(jax.random.PRNGKey(1))
    a_big = jax.random.normal(ka2, (2, 32, 56, 56), dtype=jnp.float32)
    b_big = jax.random.normal(kb2, (2, 32, 56, 56), dtype=jnp.float32)
    out_big = add(a_big, b_big)
    jax.block_until_ready(out_big)
    ref_big = a_big + b_big
    assert out_big.shape == ref_big.shape
    assert jnp.allclose(out_big, ref_big, atol=1e-6, rtol=1e-6)

    print("KERNEL_OK")
</pallas_src>

<mosaic_0001>
module attributes {stable_mosaic.version = 11 : i64} {
  func.func @_add_kernel(%arg0: i32, %arg1: memref<96x512xf32, #tpu.memory_space<vmem>>, %arg2: memref<96x512xf32, #tpu.memory_space<vmem>>, %arg3: memref<96x512xf32, #tpu.memory_space<vmem>>) attributes {dimension_semantics = [#tpu.dimension_semantics<parallel>], iteration_bounds = array<i64: 5>, scalar_prefetch = 0 : i64, scratch_operands = 0 : i64, tpu.core_type = #tpu.core_type<tc>, window_params = [{transform_indices = @transform_0, window_bounds = array<i64: 96, 512>}, {transform_indices = @transform_1, window_bounds = array<i64: 96, 512>}, {transform_indices = @transform_2, window_bounds = array<i64: 96, 512>}]} {
    %c0 = arith.constant 0 : index
    %c0_0 = arith.constant 0 : index
    %0 = vector.load %arg1[%c0, %c0_0] : memref<96x512xf32, #tpu.memory_space<vmem>>, vector<96x512xf32>
    %c0_1 = arith.constant 0 : index
    %c0_2 = arith.constant 0 : index
    %1 = vector.load %arg2[%c0_1, %c0_2] : memref<96x512xf32, #tpu.memory_space<vmem>>, vector<96x512xf32>
    %2 = arith.addf %0, %1 : vector<96x512xf32>
    %c0_3 = arith.constant 0 : index
    %c0_4 = arith.constant 0 : index
    %3 = vector.load %arg3[%c0_3, %c0_4] : memref<96x512xf32, #tpu.memory_space<vmem>>, vector<96x512xf32>
    tpu.vector_store %arg3[%c0_3, %c0_4], %2 {strides = array<i32>} : memref<96x512xf32, #tpu.memory_space<vmem>>, vector<96x512xf32>,
    return
  }
  func.func @transform_0(%arg0: i32) -> (i32, i32) {
    %c0_i32 = arith.constant 0 : i32
    %c0_i32_0 = arith.constant 0 : i32
    return %arg0, %c0_i32 : i32, i32
  }
  func.func @transform_1(%arg0: i32) -> (i32, i32) {
    %c0_i32 = arith.constant 0 : i32
    %c0_i32_0 = arith.constant 0 : i32
    return %arg0, %c0_i32 : i32, i32
  }
  func.func @transform_2(%arg0: i32) -> (i32, i32) {
    %c0_i32 = arith.constant 0 : i32
    %c0_i32_0 = arith.constant 0 : i32
    return %arg0, %c0_i32 : i32, i32
  }
}

</mosaic_0001>

<bundles_post_ra>
// kernel: tpu_custom_call.1
= control target key start
LH: loop header
LB: loop body
LE: loop exit
PB: predicated region body
PF: predicated region fallthrough
CT: control target
= control target key end

     0   :  { %7 = vsyncpa [#allocation3], 0  ;;  %s1159_s0 = inlined_call_operand.hbm [shape: f32[392,512], index: 0, kind: input, shape index: {}]   ;;  %s1160_s1 = inlined_call_operand.hbm [shape: f32[392,512], index: 1, kind: input, shape index: {}]   ;;  %s1161_s2 = inlined_call_operand.hbm [shape: f32[392,512], index: 2, kind: output, shape index: {}]  }
   0x1   :  { %9 = vsyncpa [#allocation3 + $0x1], 0 }
   0x2   :  { %10 = vsyncpa [#allocation6], 0 }
   0x3   :  { %12 = vsyncpa [#allocation6 + $0x1], 0 }
   0x4   :  { %13 = vsyncpa [#allocation4], 0 }
   0x5   :  { %15 = vsyncpa [#allocation4 + $0x1], 0  ;;  %s786_s9 = smov 0   ;;  %s788_s10 = smov 0  }
   0x6   :  { %s790_s11 = smov 0   ;;  %s792_s12 = smov 0  }
   0x7 LB: > { %s807_s13 = sadd.s32 4294967295, %s760_s12   ;;  %s546_s14 = sadd.s32 4294967294, %s760_s12   ;;  %s760_s12 = sphi %s792_s12, %s1171_s12   ;;  %s756_s11 = sphi %s790_s11, %s1170_s11   ;;  %s752_s10 = sphi %s788_s10, %s1169_s10   ;;  %s748_s9 = sphi %s786_s9, %s1168_s9  }
   0x8   : > { %s811_s15 = sadd.s32 1, %s760_s12   ;;  %s28_s16 = sadd.s32 1, %s756_s11 }
   0x9   : > { %s25_s17 = ssub.s32 %s760_s12, %s811_s15  ;;  %p35_p0 = scmp.ne.s32.totalorder %s756_s11, %s752_s10 }
   0xa   : > { %p26_p1 = scmp.eq.s32.totalorder %s25_s17, 0  ;;  %p36_p2 = scmp.eq.s32.totalorder %s760_s12, 0 }
   0xb   : > { %p41_p3 = scmp.ne.s32.totalorder %s752_s10, %s748_s9  ;;  %p42_p4 = scmp.eq.s32.totalorder %s807_s13, 0 }
   0xc   : > { %s823_s18 = scalar_select %p26_p1, %s756_s11, %s28_s16  }
   0xd   : > { %p825_p5 = por %p36_p2, %p35_p0  ;;  %p829_p6 = por %p42_p4, %p41_p3 }
   0xe   : > { %p91_p7 = scmp.eq.s32.totalorder %s807_s13, 4  ;;  %p97_p8 = scmp.eq.s32.totalorder %s546_s14, 4 }
   0xf   : > { %p548_p11 = scmp.ge.s32.totalorder %s760_s12, 5 }
  0x10   : > { %p834_p9 = por %p91_p7, %p35_p0  ;;  %p838_p10 = por %p97_p8, %p41_p3 }
  0x11   : > { %113 = sbr.rel (%p548_p11) target bundleno = 94 (0x5e), region = 16 }
  0x12   : > { %s1164_s21 = scalar_select %p834_p9, 1, 0 }
  0x13   : > { %s1165_s22 = scalar_select %p838_p10, 1, 0 }
  0x18   : > { %116 = sbr.rel (!%p825_p5) target bundleno = 59 (0x3b), region = 20  ;;  %s117_s23 = sand.u32 (%p825_p5), 1, %s756_s11  }
  0x19   : > { %s122_s24 = smul.u32 (%p825_p5), 12, %s760_s12  ;;  %s850_s29 = scalar_lea.sflag (%p825_p5), [#allocation3], %s117_s23 }
  0x1a   : > { %s585_s25 = smul.u32 (%p825_p5), 384, %s117_s23 }
  0x1b   : > { %s123_s26 = ssub.s32 (%p825_p5), 49, %s122_s24 }
  0x1c   : > { %p124_p12 = scmp.lt.s32.totalorder (%p825_p5), %s123_s26, 12  ;;  %s121_s30 = scalar_lea.vmem (%p825_p5), [#allocation2], %s585_s25 }
  0x1f   : > { %s1173_s26 = smov (!%p124_p12, %s123_s26), 12 }
  0x20   : > { %s847_s27 = sshll.u32 %s1173_s26, 9 }
  0x21   : > { %s129_s28 = ssub.s32 6144, %s847_s27 }
  0x22   : > { %130 = vsyncadd %s850_s29, %s129_s28  ;;  %p551_p13 = scmp.ne.s32.totalorder %s847_s27, 0  ;;  %s582_s3 = smul.u32 6144, %s760_s12 }
  0x23   : > { %s136_s4 = sshll.u32 %s121_s30, 4  ;;  %s638_s17 = scalar_lea.hbm %s1159_s0, 25088  ;;  %s860_s4 = int_to_ptr.vmem [resolvable:$true] %s136_s4 }
  0x24   : > { %s858_s7 = scalar_lea.hbm %s1159_s0, %s582_s3 }
  0x25   : > { %s634_s8 = scalar_lea.hbm %s858_s7, %s847_s27  ;;  %p639_p3 = scmp.lt.u32.totalorder %s858_s7, %s1159_s0 }
  0x26   : > { %p635_p0 = scmp.ne.s32.totalorder %s858_s7, %s634_s8  ;;  %p640_p4 = scmp.lt.u32.totalorder %s638_s17, %s634_s8 }
  0x27   : > { %p642_p8 = scmp.lt.u32.totalorder %s634_s8, %s858_s7 }
  0x28   : > { %p636_p1 = pnand %p635_p0, %p551_p13  ;;  %p641_p7 = por %p640_p4, %p639_p3 }
  0x2a   : > { %p637_p2 = pneg %p636_p1  ;;  %p643_p11 = por %p642_p8, %p641_p7 }
  0x2c   : > { %p644_p12 = pnand %p643_p11, %p637_p2 }
  0x2e   : > { %647 = shalt.err (!%p644_p12)
}
  0x2f   : > { %s648_s25 = scalar_lea.vmem %s860_s4, %s847_s27  ;;  %s762_s26 = smov [#allocation2]  }
  0x30   : > { %p649_p0 = scmp.ne.s32.totalorder %s860_s4, %s648_s25  ;;  %s652_s28 = sshll.u32 %s762_s26, 4  ;;  %s653_s28 = int_to_ptr.vmem [resolvable:$false] %s652_s28 }
  0x31   : > { %s654_s30 = scalar_lea.vmem %s653_s28, 12288  ;;  %p655_p9 = scmp.lt.s32.totalorder %s860_s4, %s653_s28 }
  0x32   : > { %p650_p1 = pnand %p649_p0, %p551_p13  ;;  %p656_p3 = scmp.lt.s32.totalorder %s654_s30, %s648_s25 }
  0x34   : > { %p651_p10 = pneg %p650_p1  ;;  %p657_p4 = por %p656_p3, %p655_p9 }
  0x36   : > { %p658_p7 = pnand %p657_p4, %p651_p10 }
  0x38   : > { %661 = shalt.err (!%p658_p7)
}
  0x39   : > { %s763_s3 = smov 512   ;;  %s764_s5 = smov 32  }
  0x3a   : > { %142 = dma.hbm_to_vmem [thread:$0]  (%p551_p13), %s858_s7, %s847_s27, %s860_s4, %s850_s29, %s763_s3, %s763_s3, %s764_s5  }
  0x3b PF: > { %145 = sbr.rel (!%p825_p5) target bundleno = 94 (0x5e), region = 24  ;;  %s146_s6 = sand.u32 (%p825_p5), 1, %s756_s11  }
  0x3c   : > { %s151_s8 = smul.u32 (%p825_p5), 12, %s760_s12  ;;  %s894_s24 = scalar_lea.sflag (%p825_p5), [#allocation6], %s146_s6 }
  0x3d   : > { %s586_s14 = smul.u32 (%p825_p5), 384, %s146_s6 }
  0x3e   : > { %s152_s16 = ssub.s32 (%p825_p5), 49, %s151_s8 }
  0x3f   : > { %p153_p9 = scmp.lt.s32.totalorder (%p825_p5), %s152_s16, 12  ;;  %s150_s27 = scalar_lea.vmem (%p825_p5), [#allocation5], %s586_s14 }
  0x42   : > { %s1175_s16 = smov (!%p153_p9, %s152_s16), 12 }
  0x43   : > { %s891_s17 = sshll.u32 %s1175_s16, 9 }
  0x44   : > { %s158_s23 = ssub.s32 6144, %s891_s17 }
  0x45   : > { %159 = vsyncadd %s894_s24, %s158_s23  ;;  %p558_p5 = scmp.ne.s32.totalorder %s891_s17, 0  ;;  %s583_s19 = smul.u32 6144, %s760_s12 }
  0x46   : > { %s165_s29 = sshll.u32 %s150_s27, 4  ;;  %s666_s3 = scalar_lea.hbm %s1160_s1, 25088  ;;  %s904_s29 = int_to_ptr.vmem [resolvable:$true] %s165_s29 }
  0x47   : > { %s902_s25 = scalar_lea.hbm %s1160_s1, %s583_s19 }
  0x48   : > { %s662_s26 = scalar_lea.hbm %s902_s25, %s891_s17  ;;  %p667_p8 = scmp.lt.u32.totalorder %s902_s25, %s1160_s1 }
  0x49   : > { %p663_p10 = scmp.ne.s32.totalorder %s902_s25, %s662_s26  ;;  %p668_p11 = scmp.lt.u32.totalorder %s666_s3, %s662_s26 }
  0x4a   : > { %p670_p0 = scmp.lt.u32.totalorder %s662_s26, %s902_s25 }
  0x4b   : > { %p664_p13 = pnand %p663_p10, %p558_p5  ;;  %p669_p12 = por %p668_p11, %p667_p8 }
  0x4d   : > { %p665_p2 = pneg %p664_p13  ;;  %p671_p1 = por %p670_p0, %p669_p12 }
  0x4f   : > { %p672_p3 = pnand %p671_p1, %p665_p2 }
  0x51   : > { %675 = shalt.err (!%p672_p3)
}
  0x52   : > { %s676_s8 = scalar_lea.vmem %s904_s29, %s891_s17  ;;  %s765_s14 = smov [#allocation5]  }
  0x53   : > { %p677_p4 = scmp.ne.s32.totalorder %s904_s29, %s676_s8  ;;  %s680_s16 = sshll.u32 %s765_s14, 4  ;;  %s681_s16 = int_to_ptr.vmem [resolvable:$false] %s680_s16 }
  0x54   : > { %s682_s23 = scalar_lea.vmem %s681_s16, 12288  ;;  %p683_p10 = scmp.lt.s32.totalorder %s904_s29, %s681_s16 }
  0x55   : > { %p678_p7 = pnand %p677_p4, %p558_p5  ;;  %p684_p13 = scmp.lt.s32.totalorder %s682_s23, %s676_s8 }
  0x57   : > { %p679_p9 = pneg %p678_p7  ;;  %p685_p8 = por %p684_p13, %p683_p10 }
  0x59   : > { %p686_p11 = pnand %p685_p8, %p679_p9 }
  0x5b   : > { %689 = shalt.err (!%p686_p11)
}
  0x5c   : > { %s766_s27 = smov 512   ;;  %s767_s19 = smov 32  }
  0x5d   : > { %171 = dma.hbm_to_vmem [thread:$0]  (%p558_p5), %s902_s25, %s891_s17, %s904_s29, %s894_s24, %s766_s27, %s766_s27, %s767_s19  }
  0x5e PF: > { %p563_p2 = scmp.ge.s32.totalorder %s760_s12, 1  ;;  %p173_p12 = scmp.lt.s32.totalorder %s760_s12, 6 }
  0x60   : > { %p174_p0 = pnand %p563_p2, %p173_p12 }
  0x61   : > { %s934_s4 = sand.u32 (!%p174_p0), 1, %s752_s10  }
  0x62   : > { %177 = sbr.rel (%p174_p0) target bundleno = 177 (0xb1), region = 28  ;;  %s180_s26 = scalar_lea.sflag (!%p174_p0), [#allocation3], %s934_s4 }
  0x63   : > { %s587_s7 = smul.u32 (!%p174_p0), 384, %s934_s4 }
  0x65   : > { %s938_s28 = scalar_lea.vmem (!%p174_p0), [#allocation2], %s587_s7 }
  0x69   : > { %735 = dma.done.wait (%p829_p6), %s180_s26, 6144  }
  0x6a   : > { %737 = vsyncadd (%p829_p6), %s180_s26, 4294961152  ;;  %s189_s17 = scalar_lea.sflag [#allocation6], %s934_s4  ;;  %s945_s24 = scalar_lea.vmem [#allocation5], %s587_s7 }
  0x6b   : > { %739 = dma.done.wait (%p829_p6), %s189_s17, 6144  }
  0x6c   : > { %741 = vsyncadd (%p829_p6), %s189_s17, 4294961152  ;;  %v236_v0 = vld [vmem:[%s938_s28] sm:$0xff]  ;;  %v237_v2 = vld [vmem:[%s938_s28 + $0x8] sm:$0xff]  ;;  %s960_s20 = scalar_lea.vmem [#allocation7], %s587_s7  ;;  %s429_s29 = scalar_lea.sflag [#allocation4], %s934_s4 }
  0x6d   : > { %v284_v1 = vld [vmem:[%s945_s24] sm:$0xff]  ;;  %v285_v4 = vld [vmem:[%s945_s24 + $0x8] sm:$0xff]  ;;  %v238_v5 = vld [vmem:[%s938_s28 + $0x10] sm:$0xff]  ;;  %p1166_p6 = scmp.ne.s32.totalorder %s1164_s21, 0 }
  0x6e   : > { %v332_v3 = vadd.f32 %v284_v1, %v236_v0  ;;  %v286_v6 = vld [vmem:[%s945_s24 + $0x10] sm:$0xff]  ;;  %v333_v7 = vadd.f32 %v285_v4, %v237_v2  ;;  %v239_v9 = vld [vmem:[%s938_s28 + $0x18] sm:$0xff]  ;;  %v240_v11 = vld [vmem:[%s938_s28 + $0x20] sm:$0xff]  ;;  %s436_s25 = smul.u32 (%p1166_p6), 12, %s807_s13 }
  0x6f   : > { %v334_v8 = vadd.f32 %v286_v6, %v238_v5  ;;  %v287_v10 = vld [vmem:[%s945_s24 + $0x18] sm:$0xff]  ;;  %v288_v13 = vld [vmem:[%s945_s24 + $0x20] sm:$0xff]  ;;  %v241_v14 = vld [vmem:[%s938_s28 + $0x28] sm:$0xff] }
  0x70   : > { %380 = vst [vmem:[%s960_s20] sm:$0xff] %v332_v3  ;;  %v335_v12 = vadd.f32 %v287_v10, %v239_v9  ;;  %v289_v15 = vld [vmem:[%s945_s24 + $0x28] sm:$0xff]  ;;  %381 = vst [vmem:[%s960_s20 + $0x8] sm:$0xff] %v333_v7  ;;  %v336_v16 = vadd.f32 %v288_v13, %v240_v11  ;;  %v242_v18 = vld [vmem:[%s938_s28 + $0x30] sm:$0xff]  ;;  %s437_s30 = ssub.s32 (%p1166_p6), 49, %s436_s25 }
  0x71   : > { %382 = vst [vmem:[%s960_s20 + $0x10] sm:$0xff] %v334_v8  ;;  %v337_v17 = vadd.f32 %v289_v15, %v241_v14  ;;  %v290_v19 = vld [vmem:[%s945_s24 + $0x30] sm:$0xff]  ;;  %v243_v20 = vld [vmem:[%s938_s28 + $0x38] sm:$0xff]  ;;  %v244_v23 = vld [vmem:[%s938_s28 + $0x40] sm:$0xff]  ;;  %p438_p5 = scmp.lt.s32.totalorder (%p1166_p6), %s437_s30, 12 }
  0x72   : > { %383 = vst [vmem:[%s960_s20 + $0x18] sm:$0xff] %v335_v12  ;;  %v338_v21 = vadd.f32 %v290_v19, %v242_v18  ;;  %v291_v22 = vld [vmem:[%s945_s24 + $0x38] sm:$0xff]  ;;  %v292_v24 = vld [vmem:[%s945_s24 + $0x40] sm:$0xff]  ;;  %384 = vst [vmem:[%s960_s20 + $0x20] sm:$0xff] %v336_v16 }
  0x73   : > { %385 = vst [vmem:[%s960_s20 + $0x28] sm:$0xff] %v337_v17  ;;  %v339_v25 = vadd.f32 %v291_v22, %v243_v20  ;;  %v340_v26 = vadd.f32 %v292_v24, %v244_v23  ;;  %v245_v27 = vld [vmem:[%s938_s28 + $0x48] sm:$0xff]  ;;  %v246_v29 = vld [vmem:[%s938_s28 + $0x50] sm:$0xff]  ;;  %v247_v32 = vld [vmem:[%s938_s28 + $0x58] sm:$0xff] }
  0x74   : > { %v293_v28 = vld [vmem:[%s945_s24 + $0x48] sm:$0xff]  ;;  %386 = vst [vmem:[%s960_s20 + $0x30] sm:$0xff] %v338_v21  ;;  %v294_v31 = vld [vmem:[%s945_s24 + $0x50] sm:$0xff]  ;;  %v295_v33 = vld [vmem:[%s945_s24 + $0x58] sm:$0xff] }
  0x75   : > { %v341_v30 = vadd.f32 %v293_v28, %v245_v27  ;;  %387 = vst [vmem:[%s960_s20 + $0x38] sm:$0xff] %v339_v25  ;;  %388 = vst [vmem:[%s960_s20 + $0x40] sm:$0xff] %v340_v26  ;;  %v342_v34 = vadd.f32 %v294_v31, %v246_v29  ;;  %v343_v35 = vadd.f32 %v295_v33, %v247_v32  ;;  %v248_v36 = vld [vmem:[%s938_s28 + $0x60] sm:$0xff]  ;;  %v249_v38 = vld [vmem:[%s938_s28 + $0x68] sm:$0xff] }
  0x76   : > { %v296_v37 = vld [vmem:[%s945_s24 + $0x60] sm:$0xff]  ;;  %v297_v40 = vld [vmem:[%s945_s24 + $0x68] sm:$0xff]  ;;  %v250_v41 = vld [vmem:[%s938_s28 + $0x70] sm:$0xff] }
  0x77   : > { %389 = vst [vmem:[%s960_s20 + $0x48] sm:$0xff] %v341_v30  ;;  %v344_v39 = vadd.f32 %v296_v37, %v248_v36  ;;  %v298_v42 = vld [vmem:[%s945_s24 + $0x70] sm:$0xff]  ;;  %390 = vst [vmem:[%s960_s20 + $0x50] sm:$0xff] %v342_v34  ;;  %v345_v43 = vadd.f32 %v297_v40, %v249_v38  ;;  %v251_v45 = vld [vmem:[%s938_s28 + $0x78] sm:$0xff] }
  0x78   : > { %391 = vst [vmem:[%s960_s20 + $0x58] sm:$0xff] %v343_v35  ;;  %v346_v44 = vadd.f32 %v298_v42, %v250_v41  ;;  %v299_v46 = vld [vmem:[%s945_s24 + $0x78] sm:$0xff]  ;;  %v252_v47 = vld [vmem:[%s938_s28 + $0x80] sm:$0xff]  ;;  %v253_v50 = vld [vmem:[%s938_s28 + $0x88] sm:$0xff] }
  0x79   : > { %392 = vst [vmem:[%s960_s20 + $0x60] sm:$0xff] %v344_v39  ;;  %v347_v48 = vadd.f32 %v299_v46, %v251_v45  ;;  %v300_v49 = vld [vmem:[%s945_s24 + $0x80] sm:$0xff]  ;;  %v301_v51 = vld [vmem:[%s945_s24 + $0x88] sm:$0xff]  ;;  %393 = vst [vmem:[%s960_s20 + $0x68] sm:$0xff] %v345_v43 }
  0x7a   : > { %394 = vst [vmem:[%s960_s20 + $0x70] sm:$0xff] %v346_v44  ;;  %v348_v52 = vadd.f32 %v300_v49, %v252_v47  ;;  %v349_v53 = vadd.f32 %v301_v51, %v253_v50  ;;  %v254_v54 = vld [vmem:[%s938_s28 + $0x90] sm:$0xff]  ;;  %v255_v56 = vld [vmem:[%s938_s28 + $0x98] sm:$0xff]  ;;  %v256_v59 = vld [vmem:[%s938_s28 + $0xa0] sm:$0xff] }
  0x7b   : > { %v302_v55 = vld [vmem:[%s945_s24 + $0x90] sm:$0xff]  ;;  %395 = vst [vmem:[%s960_s20 + $0x78] sm:$0xff] %v347_v48  ;;  %v303_v58 = vld [vmem:[%s945_s24 + $0x98] sm:$0xff]  ;;  %v304_v60 = vld [vmem:[%s945_s24 + $0xa0] sm:$0xff] }
  0x7c   : > { %v350_v57 = vadd.f32 %v302_v55, %v254_v54  ;;  %396 = vst [vmem:[%s960_s20 + $0x80] sm:$0xff] %v348_v52  ;;  %397 = vst [vmem:[%s960_s20 + $0x88] sm:$0xff] %v349_v53  ;;  %v351_v61 = vadd.f32 %v303_v58, %v255_v56  ;;  %v352_v62 = vadd.f32 %v304_v60, %v256_v59  ;;  %v257_v63 = vld [vmem:[%s938_s28 + $0xa8] sm:$0xff]  ;;  %v258_v1 = vld [vmem:[%s938_s28 + $0xb0] sm:$0xff] }
  0x7d   : > { %v305_v0 = vld [vmem:[%s945_s24 + $0xa8] sm:$0xff]  ;;  %v306_v3 = vld [vmem:[%s945_s24 + $0xb0] sm:$0xff]  ;;  %v259_v4 = vld [vmem:[%s938_s28 + $0xb8] sm:$0xff] }
  0x7e   : > { %398 = vst [vmem:[%s960_s20 + $0x90] sm:$0xff] %v350_v57  ;;  %v353_v2 = vadd.f32 %v305_v0, %v257_v63  ;;  %v307_v5 = vld [vmem:[%s945_s24 + $0xb8] sm:$0xff]  ;;  %399 = vst [vmem:[%s960_s20 + $0x98] sm:$0xff] %v351_v61  ;;  %v354_v6 = vadd.f32 %v306_v3, %v258_v1  ;;  %v260_v8 = vld [vmem:[%s938_s28 + $0xc0] sm:$0xff] }
  0x7f   : > { %400 = vst [vmem:[%s960_s20 + $0xa0] sm:$0xff] %v352_v62  ;;  %v355_v7 = vadd.f32 %v307_v5, %v259_v4  ;;  %v308_v9 = vld [vmem:[%s945_s24 + $0xc0] sm:$0xff]  ;;  %v261_v10 = vld [vmem:[%s938_s28 + $0xc8] sm:$0xff]  ;;  %v262_v13 = vld [vmem:[%s938_s28 + $0xd0] sm:$0xff] }
  0x80   : > { %401 = vst [vmem:[%s960_s20 + $0xa8] sm:$0xff] %v353_v2  ;;  %v356_v11 = vadd.f32 %v308_v9, %v260_v8  ;;  %v309_v12 = vld [vmem:[%s945_s24 + $0xc8] sm:$0xff]  ;;  %v310_v14 = vld [vmem:[%s945_s24 + $0xd0] sm:$0xff]  ;;  %402 = vst [vmem:[%s960_s20 + $0xb0] sm:$0xff] %v354_v6 }
  0x81   : > { %403 = vst [vmem:[%s960_s20 + $0xb8] sm:$0xff] %v355_v7  ;;  %v357_v15 = vadd.f32 %v309_v12, %v261_v10  ;;  %v358_v16 = vadd.f32 %v310_v14, %v262_v13  ;;  %v263_v17 = vld [vmem:[%s938_s28 + $0xd8] sm:$0xff]  ;;  %v264_v19 = vld [vmem:[%s938_s28 + $0xe0] sm:$0xff]  ;;  %v265_v22 = vld [vmem:[%s938_s28 + $0xe8] sm:$0xff] }
  0x82   : > { %v311_v18 = vld [vmem:[%s945_s24 + $0xd8] sm:$0xff]  ;;  %404 = vst [vmem:[%s960_s20 + $0xc0] sm:$0xff] %v356_v11  ;;  %v312_v21 = vld [vmem:[%s945_s24 + $0xe0] sm:$0xff]  ;;  %v313_v23 = vld [vmem:[%s945_s24 + $0xe8] sm:$0xff] }
  0x83   : > { %v359_v20 = vadd.f32 %v311_v18, %v263_v17  ;;  %405 = vst [vmem:[%s960_s20 + $0xc8] sm:$0xff] %v357_v15  ;;  %406 = vst [vmem:[%s960_s20 + $0xd0] sm:$0xff] %v358_v16  ;;  %v360_v24 = vadd.f32 %v312_v21, %v264_v19  ;;  %v361_v25 = vadd.f32 %v313_v23, %v265_v22  ;;  %v266_v26 = vld [vmem:[%s938_s28 + $0xf0] sm:$0xff]  ;;  %v267_v28 = vld [vmem:[%s938_s28 + $0xf8] sm:$0xff] }
  0x84   : > { %v314_v27 = vld [vmem:[%s945_s24 + $0xf0] sm:$0xff]  ;;  %v315_v30 = vld [vmem:[%s945_s24 + $0xf8] sm:$0xff]  ;;  %v268_v31 = vld [vmem:[%s938_s28 + $0x100] sm:$0xff] }
  0x85   : > { %407 = vst [vmem:[%s960_s20 + $0xd8] sm:$0xff] %v359_v20  ;;  %v362_v29 = vadd.f32 %v314_v27, %v266_v26  ;;  %v316_v32 = vld [vmem:[%s945_s24 + $0x100] sm:$0xff]  ;;  %408 = vst [vmem:[%s960_s20 + $0xe0] sm:$0xff] %v360_v24  ;;  %v363_v33 = vadd.f32 %v315_v30, %v267_v28  ;;  %v269_v35 = vld [vmem:[%s938_s28 + $0x108] sm:$0xff] }
  0x86   : > { %409 = vst [vmem:[%s960_s20 + $0xe8] sm:$0xff] %v361_v25  ;;  %v364_v34 = vadd.f32 %v316_v32, %v268_v31  ;;  %v317_v36 = vld [vmem:[%s945_s24 + $0x108] sm:$0xff]  ;;  %v270_v37 = vld [vmem:[%s938_s28 + $0x110] sm:$0xff]  ;;  %v271_v40 = vld [vmem:[%s938_s28 + $0x118] sm:$0xff] }
  0x87   : > { %410 = vst [vmem:[%s960_s20 + $0xf0] sm:$0xff] %v362_v29  ;;  %v365_v38 = vadd.f32 %v317_v36, %v269_v35  ;;  %v318_v39 = vld [vmem:[%s945_s24 + $0x110] sm:$0xff]  ;;  %v319_v41 = vld [vmem:[%s945_s24 + $0x118] sm:$0xff]  ;;  %411 = vst [vmem:[%s960_s20 + $0xf8] sm:$0xff] %v363_v33 }
  0x88   : > { %412 = vst [vmem:[%s960_s20 + $0x100] sm:$0xff] %v364_v34  ;;  %v366_v42 = vadd.f32 %v318_v39, %v270_v37  ;;  %v367_v43 = vadd.f32 %v319_v41, %v271_v40  ;;  %v272_v44 = vld [vmem:[%s938_s28 + $0x120] sm:$0xff]  ;;  %v273_v46 = vld [vmem:[%s938_s28 + $0x128] sm:$0xff]  ;;  %v274_v49 = vld [vmem:[%s938_s28 + $0x130] sm:$0xff] }
  0x89   : > { %v320_v45 = vld [vmem:[%s945_s24 + $0x120] sm:$0xff]  ;;  %413 = vst [vmem:[%s960_s20 + $0x108] sm:$0xff] %v365_v38  ;;  %v321_v48 = vld [vmem:[%s945_s24 + $0x128] sm:$0xff]  ;;  %v322_v50 = vld [vmem:[%s945_s24 + $0x130] sm:$0xff] }
  0x8a   : > { %v368_v47 = vadd.f32 %v320_v45, %v272_v44  ;;  %414 = vst [vmem:[%s960_s20 + $0x110] sm:$0xff] %v366_v42  ;;  %415 = vst [vmem:[%s960_s20 + $0x118] sm:$0xff] %v367_v43  ;;  %v369_v51 = vadd.f32 %v321_v48, %v273_v46  ;;  %v370_v52 = vadd.f32 %v322_v50, %v274_v49  ;;  %v275_v53 = vld [vmem:[%s938_s28 + $0x138] sm:$0xff]  ;;  %v276_v55 = vld [vmem:[%s938_s28 + $0x140] sm:$0xff] }
  0x8b   : > { %v323_v54 = vld [vmem:[%s945_s24 + $0x138] sm:$0xff]  ;;  %v324_v57 = vld [vmem:[%s945_s24 + $0x140] sm:$0xff]  ;;  %v277_v58 = vld [vmem:[%s938_s28 + $0x148] sm:$0xff] }
  0x8c   : > { %416 = vst [vmem:[%s960_s20 + $0x120] sm:$0xff] %v368_v47  ;;  %v371_v56 = vadd.f32 %v323_v54, %v275_v53  ;;  %v325_v59 = vld [vmem:[%s945_s24 + $0x148] sm:$0xff]  ;;  %417 = vst [vmem:[%s960_s20 + $0x128] sm:$0xff] %v369_v51  ;;  %v372_v60 = vadd.f32 %v324_v57, %v276_v55  ;;  %v278_v62 = vld [vmem:[%s938_s28 + $0x150] sm:$0xff] }
  0x8d   : > { %418 = vst [vmem:[%s960_s20 + $0x130] sm:$0xff] %v370_v52  ;;  %v373_v61 = vadd.f32 %v325_v59, %v277_v58  ;;  %v326_v63 = vld [vmem:[%s945_s24 + $0x150] sm:$0xff]  ;;  %v279_v0 = vld [vmem:[%s938_s28 + $0x158] sm:$0xff]  ;;  %v280_v3 = vld [vmem:[%s938_s28 + $0x160] sm:$0xff] }
  0x8e   : > { %419 = vst [vmem:[%s960_s20 + $0x138] sm:$0xff] %v371_v56  ;;  %v374_v1 = vadd.f32 %v326_v63, %v278_v62  ;;  %v327_v2 = vld [vmem:[%s945_s24 + $0x158] sm:$0xff]  ;;  %v328_v4 = vld [vmem:[%s945_s24 + $0x160] sm:$0xff]  ;;  %420 = vst [vmem:[%s960_s20 + $0x140] sm:$0xff] %v372_v60  ;;  %435 = sbr.rel (!%p1166_p6) target bundleno = 177 (0xb1), region = 40 }
  0x8f   : > { %421 = vst [vmem:[%s960_s20 + $0x148] sm:$0xff] %v373_v61  ;;  %v375_v5 = vadd.f32 %v327_v2, %v279_v0  ;;  %v376_v6 = vadd.f32 %v328_v4, %v280_v3  ;;  %v281_v7 = vld [vmem:[%s938_s28 + $0x168] sm:$0xff]  ;;  %v282_v9 = vld [vmem:[%s938_s28 + $0x170] sm:$0xff]  ;;  %v283_v12 = vld [vmem:[%s938_s28 + $0x178] sm:$0xff] }
  0x90   : > { %v329_v8 = vld [vmem:[%s945_s24 + $0x168] sm:$0xff]  ;;  %422 = vst [vmem:[%s960_s20 + $0x150] sm:$0xff] %v374_v1  ;;  %v330_v11 = vld [vmem:[%s945_s24 + $0x170] sm:$0xff]  ;;  %v331_v13 = vld [vmem:[%s945_s24 + $0x178] sm:$0xff] }
  0x91   : > { %v377_v10 = vadd.f32 %v329_v8, %v281_v7  ;;  %423 = vst [vmem:[%s960_s20 + $0x158] sm:$0xff] %v375_v5  ;;  %424 = vst [vmem:[%s960_s20 + $0x160] sm:$0xff] %v376_v6  ;;  %v378_v14 = vadd.f32 %v330_v11, %v282_v9  ;;  %v379_v15 = vadd.f32 %v331_v13, %v283_v12 }
  0x93   : > { %425 = vst [vmem:[%s960_s20 + $0x168] sm:$0xff] %v377_v10  ;;  %426 = vst [vmem:[%s960_s20 + $0x170] sm:$0xff] %v378_v14 }
  0x94   : > { %427 = vst [vmem:[%s960_s20 + $0x178] sm:$0xff] %v379_v15 }
  0x95   : > { %s1177_s30 = smov (!%p438_p5, %s437_s30), 12 }
  0x96   : > { %s1101_s3 = sshll.u32 %s1177_s30, 9 }
  0x97   : > { %s443_s5 = ssub.s32 6144, %s1101_s3 }
  0x98   : > { %444 = vsyncadd %s429_s29, %s443_s5  ;;  %p566_p1 = scmp.ne.s32.totalorder %s1101_s3, 0  ;;  %s584_s21 = smul.u32 6144, %s807_s13 }
  0x99   : > { %s450_s6 = sshll.u32 %s960_s20, 4  ;;  %s768_s27 = smov [#allocation7]   ;;  %s1114_s6 = int_to_ptr.vmem [resolvable:$true] %s450_s6 }
  0x9a   : > { %s1112_s16 = scalar_lea.hbm %s1161_s2, %s584_s21  ;;  %s690_s23 = scalar_lea.vmem %s1114_s6, %s1101_s3 }
  0x9b   : > { %p691_p3 = scmp.ne.s32.totalorder %s1114_s6, %s690_s23  ;;  %s694_s19 = sshll.u32 %s768_s27, 4  ;;  %s695_s19 = int_to_ptr.vmem [resolvable:$false] %s694_s19 }
  0x9c   : > { %s696_s13 = scalar_lea.vmem %s695_s19, 12288  ;;  %p697_p9 = scmp.lt.s32.totalorder %s1114_s6, %s695_s19 }
  0x9d   : > { %p692_p4 = pnand %p691_p3, %p566_p1  ;;  %p698_p10 = scmp.lt.s32.totalorder %s696_s13, %s690_s23 }
  0x9f   : > { %p693_p7 = pneg %p692_p4  ;;  %p699_p13 = por %p698_p10, %p697_p9 }
  0xa1   : > { %p700_p8 = pnand %p699_p13, %p693_p7 }
  0xa3   : > { %703 = shalt.err (!%p700_p8)
}
  0xa4   : > { %s704_s7 = scalar_lea.hbm %s1112_s16, %s1101_s3  ;;  %s708_s17 = scalar_lea.hbm %s1161_s2, 25088 }
  0xa5   : > { %p705_p11 = scmp.ne.s32.totalorder %s1112_s16, %s704_s7  ;;  %p709_p0 = scmp.lt.u32.totalorder %s1112_s16, %s1161_s2 }
  0xa6   : > { %p710_p6 = scmp.lt.u32.totalorder %s708_s17, %s704_s7  ;;  %p712_p3 = scmp.lt.u32.totalorder %s704_s7, %s1112_s16 }
  0xa7   : > { %p706_p2 = pnand %p705_p11, %p566_p1 }
  0xa8   : > { %p711_p5 = por %p710_p6, %p709_p0 }
  0xa9   : > { %p707_p12 = pneg %p706_p2 }
  0xaa   : > { %p713_p4 = por %p712_p3, %p711_p5 }
  0xac   : > { %p714_p7 = pnand %p713_p4, %p707_p12 }
  0xae   : > { %717 = shalt.err (!%p714_p7)
}
  0xaf   : > { %s769_s25 = smov 512   ;;  %s770_s30 = smov 32  }
  0xb0   : > { %456 = dma.vmem_to_hbm [thread:$0]  (%p566_p1), %s1114_s6, %s1101_s3, %s1112_s16, %s429_s29, %s769_s25, %s769_s25, %s770_s30  }
  0xb1 PF: > { %p595_p9 = scmp.ge.s32.totalorder %s760_s12, 2  ;;  %s465_s5 = sand.u32 1, %s748_s9  }
  0xb2   : > { %p1167_p10 = scmp.ne.s32.totalorder %s1165_s22, 0  ;;  %s466_s21 = scalar_lea.sflag [#allocation4], %s465_s5 }
  0xb4   : > { %p592_p13 = pnand %p595_p9, %p1167_p10 }
  0xb6   : > { %743 = dma.done.wait (!%p592_p13), %s466_s21, 6144  }
  0xb7   : > { %745 = vsyncadd (!%p592_p13), %s466_s21, 4294961152  ;;  %p18_p8 = scmp.ge.s32.totalorder %s811_s15, 7   ;;  %s1168_s9 = smov %s752_s10 }
  0xb8   : > { %s1169_s10 = smov %s756_s11  ;;  %s1170_s11 = smov %s823_s18 }
  0xb9   : > { %s1171_s12 = smov %s811_s15  ;;  %20 = sbr.rel (!%p18_p8) target bundleno = 7 (0x7), region = 86 }
  0xc0   :  { %471 = vsyncpa [#allocation3], 1 }
  0xc1   :  { %473 = vsyncpa [#allocation3 + $0x1], 1 }
  0xc2   :  { %474 = vsyncpa [#allocation6], 1 }
  0xc3   :  { %476 = vsyncpa [#allocation6 + $0x1], 1 }
  0xc4   :  { %477 = vsyncpa [#allocation4], 1 }
  0xc5   :  { %479 = vsyncpa [#allocation4 + $0x1], 1 }

</bundles_post_ra>
